<compile_context>
chip_gen: v7x
topology: tpu7x:2x2x1
jax: 0.10.0
libtpu: 0.0.40
codegen_flags: <defaults>
</compile_context>

<pallas_src>
import functools
from math import sqrt

import jax
import jax.numpy as jnp
from jax.experimental import pallas as pl
from jax.experimental.pallas import tpu as pltpu


def _round_up(x, m):
    return ((x + m - 1) // m) * m


def _default_param_dtype():
    """bf16 on v6e/v7x (2x256^2 bf16 MXU, halves resident-weight VMEM), f32 elsewhere."""
    try:
        kind = jax.devices()[0].device_kind.lower()
    except Exception:
        return jnp.float32
    if any(t in kind for t in ("v6", "v7", "trillium")):
        return jnp.bfloat16
    return jnp.float32


def _vmem_budget_bytes():
    """Physical VMEM of this chip; conservative 64 MiB (v7x) when unknown."""
    try:
        return int(pltpu.get_tpu_info().vmem_capacity_bytes)
    except Exception:
        return 64 << 20


def _pick_batch_tile(batch, tile_batch):
    """Largest 16-multiple tile <= tile_batch that still leaves >=4 (or >=2) grid steps."""
    tile_batch = max(16, (tile_batch // 16) * 16)
    batch_16 = _round_up(batch, 16)
    if batch_16 >= 4 * 16:
        target_tiles = 4        # >= 2 steps per TensorCore on v7x megacore
    elif batch_16 >= 2 * 16:
        target_tiles = 2        # at least keep the DMA/compute pipeline going
    else:
        target_tiles = 1
    tb = min(tile_batch, _round_up(pl.cdiv(batch_16, target_tiles), 16))
    tb = max(16, tb)
    batch_p = _round_up(batch, tb)
    return tb, batch_p


def _mlp_kernel(*refs, num_linear, act_flags, compute_dtype):
    """One batch tile through `num_linear` Linear(+ReLU) layers, all on-chip.

    refs = (x_ref, w0, b0, w1, b1, ..., w_{L-1}, b_{L-1}, o_ref)
    """
    x_ref = refs[0]
    o_ref = refs[1 + 2 * num_linear]

    h = x_ref[...].astype(compute_dtype)                 # single cast of the input tile
    for l in range(num_linear):
        w_ref = refs[1 + 2 * l]                          # (f_in, f_out_p) compute_dtype
        b_ref = refs[2 + 2 * l]                          # (1, f_out_p) f32
        y = jnp.dot(h, w_ref[...], preferred_element_type=jnp.float32)  # MXU, f32 accum
        y = y + b_ref[...].astype(jnp.float32)           # bias/ReLU stay in f32 (VPU)
        if act_flags[l]:
            y = jnp.maximum(y, 0.0)
        # one cast per layer: intermediates back to compute dtype, final stays f32
        h = y.astype(compute_dtype) if l + 1 < num_linear else y
    o_ref[...] = h.astype(o_ref.dtype)


def _run_layers(x, weights, biases, act_flags, *, compute_dtype, out_dtype, tb, batch_p):
    """One pallas_call covering `len(weights)` consecutive layers (weights VMEM-resident)."""
    batch, dim_in = x.shape
    num_linear = len(weights)
    dim_out_p = weights[-1].shape[1]
    out_dtype = jnp.dtype(out_dtype)
    grid = (batch_p // tb,)

    if batch_p != batch:                                  # fast path: no copy when aligned
        x = jnp.pad(x, ((0, batch_p - batch), (0, 0)))

    inputs = [x]
    for w, b in zip(weights, biases):
        inputs += [w, b]

    def build_in_specs(single_buffer):
        specs = [pl.BlockSpec((tb, dim_in), lambda i: (i, 0))]
        for w, b in zip(weights, biases):
            f_in, f_out = w.shape
            if single_buffer:
                # constant index map -> block never changes; one buffer is enough
                specs.append(pl.BlockSpec((f_in, f_out), lambda i: (0, 0),
                                          pipeline_mode=pl.Buffered(1)))
                specs.append(pl.BlockSpec((1, f_out), lambda i: (0, 0),
                                          pipeline_mode=pl.Buffered(1)))
            else:
                specs.append(pl.BlockSpec((f_in, f_out), lambda i: (0, 0)))
                specs.append(pl.BlockSpec((1, f_out), lambda i: (0, 0)))
        return specs

    out_specs = pl.BlockSpec((tb, dim_out_p), lambda i: (i, 0))

    # Advisory cost estimate: weights counted ONCE (VMEM-resident across the grid).
    w_bytes = sum(w.size * w.dtype.itemsize + b.size * b.dtype.itemsize
                  for w, b in zip(weights, biases))
    flops = sum(2 * batch_p * w.shape[0] * w.shape[1] for w in weights)
    bytes_accessed = (x.size * x.dtype.itemsize + w_bytes
                      + batch_p * dim_out_p * out_dtype.itemsize)

    # Explicit scoped-VMEM limit: resident weights (x2 headroom covers the double-buffer
    # fallback) + input/output pipeline buffers + live f32 intermediates, +25% slack.
    max_width = max(w.shape[1] for w in weights)
    needed = (2 * w_bytes
              + 2 * tb * (dim_in * x.dtype.itemsize + dim_out_p * out_dtype.itemsize)
              + 2 * tb * max_width * 4)
    vmem_limit = int(min(64 << 20, max(32 << 20, int(needed * 1.25))))

    def call(single_buffer):
        out = pl.pallas_call(
            functools.partial(_mlp_kernel, num_linear=num_linear,
                              act_flags=tuple(act_flags), compute_dtype=compute_dtype),
            out_shape=jax.ShapeDtypeStruct((batch_p, dim_out_p), out_dtype),
            grid_spec=pltpu.PrefetchScalarGridSpec(
                num_scalar_prefetch=0,
                grid=grid,
                in_specs=build_in_specs(single_buffer),
                out_specs=out_specs,
            ),
            compiler_params=pltpu.CompilerParams(
                dimension_semantics=("parallel",),      # independent batch tiles
                vmem_limit_bytes=vmem_limit,
            ),
            cost_estimate=pl.CostEstimate(flops=flops, transcendentals=0,
                                          bytes_accessed=bytes_accessed),
        )(*inputs)
        return jax.block_until_ready(out)

    try:
        return call(single_buffer=True)
    except Exception:
        # pl.Buffered(1) not supported by this jax build -> default double buffering.
        return call(single_buffer=False)


def fused_mlp_forward(x, weights_p, biases_p, *, dim_out, tile_batch=512,
                      compute_dtype=jnp.float32):
    """Run the MLP. `weights_p`/`biases_p` have lane-padded (x128) output dims."""
    num_linear = len(weights_p)
    batch = x.shape[0]
    dim_out_p = weights_p[-1].shape[1]
    out_dtype = jnp.dtype(compute_dtype)
    act_flags = [True] * (num_linear - 1) + [False]       # ReLU on all but the final layer

    tb, batch_p = _pick_batch_tile(batch, tile_batch)

    # VMEM-budget guard (matters on v7x's 64 MiB): estimate the fused, all-weights-resident
    # footprint and fall back to chained per-layer calls if it would not fit comfortably.
    w_bytes = sum(w.size * w.dtype.itemsize + b.size * b.dtype.itemsize
                  for w, b in zip(weights_p, biases_p))
    max_width = max(w.shape[1] for w in weights_p)
    fused_need = (2 * w_bytes
                  + 2 * tb * (x.shape[1] * x.dtype.itemsize + dim_out_p * out_dtype.itemsize)
                  + 2 * tb * max_width * 4)

    if fused_need <= 0.7 * _vmem_budget_bytes():
        out_p = _run_layers(x, weights_p, biases_p, act_flags,
                            compute_dtype=compute_dtype, out_dtype=out_dtype,
                            tb=tb, batch_p=batch_p)
    else:
        # TODO(synk): a single layer wider than VMEM would additionally need a K/N-tiled grid.
        h = x
        for l in range(num_linear):
            layer_out = out_dtype if l == num_linear - 1 else jnp.dtype(compute_dtype)
            h = _run_layers(h, [weights_p[l]], [biases_p[l]], [act_flags[l]],
                            compute_dtype=compute_dtype, out_dtype=layer_out,
                            tb=tb, batch_p=batch_p)
        out_p = h

    if batch_p == batch and dim_out_p == dim_out:
        return out_p                                      # lane-dense, no extra slice/copy
    return out_p[:batch, :dim_out]


class PallasNN:
    """JAX/Pallas equivalent of the PyTorch `NN` regression MLP (forward only)."""

    def __init__(self, dim_in, dim_hidden, dim_out, n_layers=1, act_name="relu",
                 seed=0, param_dtype=None, tile_batch=512):
        if act_name != "relu":
            # TODO(synk): `get_act` source not provided; only ReLU is implemented.
            raise NotImplementedError("only 'relu' activation is supported")
        self.dim_in, self.dim_hidden, self.dim_out = dim_in, dim_hidden, dim_out
        self.n_layers = n_layers
        self.param_dtype = jnp.dtype(param_dtype if param_dtype is not None
                                     else _default_param_dtype())
        self.tile_batch = tile_batch

        dims = [dim_in] + [dim_hidden] * n_layers + [dim_out]
        # Pad only the OUTPUT (lane) dims to multiples of 128; fan_in of layer 0 stays dim_in.
        out_p = [_round_up(d, 128) for d in dims[1:]]
        in_p = [dim_in] + out_p[:-1]

        key = jax.random.PRNGKey(seed)
        self.params = []       # unpadded f32 (w, b) — used by the pure-JAX reference
        self.weights_p = []    # padded, kernel inputs (param_dtype)
        self.biases_p = []     # padded, kernel inputs (f32)
        for l, (f_in, f_out) in enumerate(zip(dims[:-1], dims[1:])):
            key, kw, kb = jax.random.split(key, 3)
            bound = 1.0 / sqrt(f_in)                      # torch.nn.Linear default init range
            w = jax.random.uniform(kw, (f_in, f_out), jnp.float32, -bound, bound)
            b = jax.random.uniform(kb, (f_out,), jnp.float32, -bound, bound)
            self.params.append((w, b))
            w_p = jnp.zeros((in_p[l], out_p[l]), self.param_dtype)
            w_p = w_p.at[:f_in, :f_out].set(w.astype(self.param_dtype))
            b_p = jnp.zeros((1, out_p[l]), jnp.float32).at[0, :f_out].set(b)
            self.weights_p.append(w_p)
            self.biases_p.append(b_p)

    def forward(self, x):
        return fused_mlp_forward(
            x, self.weights_p, self.biases_p,
            dim_out=self.dim_out, tile_batch=self.tile_batch,
            compute_dtype=self.param_dtype)

    __call__ = forward

    def reference(self, x):
        """Pure-JAX reference mirroring the kernel's dtype handling (f32 accumulation)."""
        h = x
        for l, (w, b) in enumerate(self.params):
            h = jnp.dot(h.astype(self.param_dtype), w.astype(self.param_dtype),
                        preferred_element_type=jnp.float32) + b
            if l < self.n_layers:
                h = jnp.maximum(h, 0.0)
        return h


if __name__ == "__main__":
    dim_in, dim_hidden, dim_out, n_layers = 16, 32, 4, 2
    batch = 256   # -> 4 batch tiles of 64 rows (pipelined, 2 per TC on v7x)

    x = jax.random.normal(jax.random.PRNGKey(0), (batch, dim_in), jnp.float32)

    # f32 path: tight check against the pure-JAX reference.
    model_f32 = PallasNN(dim_in, dim_hidden, dim_out, n_layers=n_layers,
                         act_name="relu", seed=0, param_dtype=jnp.float32)
    out = model_f32(x)
    jax.block_until_ready(out)
    ref = model_f32.reference(x)
    assert out.shape == (batch, dim_out)
    assert out.dtype == jnp.float32
    assert jnp.allclose(out, ref, atol=1e-5, rtol=1e-5), float(jnp.max(jnp.abs(out - ref)))

    # Ragged batch exercises the row-padding path.
    x_odd = jax.random.normal(jax.random.PRNGKey(1), (37, dim_in), jnp.float32)
    out_odd = model_f32(x_odd)
    jax.block_until_ready(out_odd)
    ref_odd = model_f32.reference(x_odd)
    assert out_odd.shape == (37, dim_out)
    assert jnp.allclose(out_odd, ref_odd, atol=1e-5, rtol=1e-5)

    # bf16 weights/activations with f32 accumulation (v6e/v7x MXU-friendly path).
    model_bf16 = PallasNN(dim_in, dim_hidden, dim_out, n_layers=n_layers,
                          act_name="relu", seed=0, param_dtype=jnp.bfloat16)
    out_bf16 = model_bf16(x)
    jax.block_until_ready(out_bf16)
    ref_bf16 = model_bf16.reference(x)
    assert jnp.allclose(out_bf16.astype(jnp.float32), ref_bf16, atol=5e-2, rtol=5e-2)

    print("KERNEL_OK")
</pallas_src>

<mosaic_0001>
module attributes {stable_mosaic.version = 11 : i64} {
  func.func @_mlp_kernel(%arg0: i32, %arg1: memref<64x16xf32, #tpu.memory_space<vmem>>, %arg2: memref<16x128xf32, #tpu.memory_space<vmem>>, %arg3: memref<1x128xf32, #tpu.memory_space<vmem>>, %arg4: memref<128x128xf32, #tpu.memory_space<vmem>>, %arg5: memref<1x128xf32, #tpu.memory_space<vmem>>, %arg6: memref<128x128xf32, #tpu.memory_space<vmem>>, %arg7: memref<1x128xf32, #tpu.memory_space<vmem>>, %arg8: memref<64x128xf32, #tpu.memory_space<vmem>>) attributes {dimension_semantics = [#tpu.dimension_semantics<parallel>], iteration_bounds = array<i64: 4>, scalar_prefetch = 0 : i64, scratch_operands = 0 : i64, tpu.core_type = #tpu.core_type<tc>, window_params = [{transform_indices = @transform_0, window_bounds = array<i64: 64, 16>}, {pipeline_mode = #tpu.pipeline_mode<synchronous>, transform_indices = @transform_1, window_bounds = array<i64: 16, 128>}, {pipeline_mode = #tpu.pipeline_mode<synchronous>, transform_indices = @transform_2, window_bounds = array<i64: 1, 128>}, {pipeline_mode = #tpu.pipeline_mode<synchronous>, transform_indices = @transform_3, window_bounds = array<i64: 128, 128>}, {pipeline_mode = #tpu.pipeline_mode<synchronous>, transform_indices = @transform_4, window_bounds = array<i64: 1, 128>}, {pipeline_mode = #tpu.pipeline_mode<synchronous>, transform_indices = @transform_5, window_bounds = array<i64: 128, 128>}, {pipeline_mode = #tpu.pipeline_mode<synchronous>, transform_indices = @transform_6, window_bounds = array<i64: 1, 128>}, {transform_indices = @transform_7, window_bounds = array<i64: 64, 128>}]} {
    %c0 = arith.constant 0 : index
    %c0_0 = arith.constant 0 : index
    %0 = vector.load %arg1[%c0, %c0_0] : memref<64x16xf32, #tpu.memory_space<vmem>>, vector<64x16xf32>
    %c0_1 = arith.constant 0 : index
    %c0_2 = arith.constant 0 : index
    %1 = vector.load %arg2[%c0_1, %c0_2] : memref<16x128xf32, #tpu.memory_space<vmem>>, vector<16x128xf32>
    %cst = arith.constant dense<0.000000e+00> : vector<64x128xf32>
    %2 = tpu.matmul %0, %1, %cst {dimension_numbers = #tpu.dot_dimension_numbers<[1], [0], [0], [1], [0, 0, 1, 1], [], []>} : vector<64x16xf32>, vector<16x128xf32>, vector<64x128xf32> -> vector<64x128xf32>
    %c0_3 = arith.constant 0 : index
    %c0_4 = arith.constant 0 : index
    %3 = vector.load %arg3[%c0_3, %c0_4] : memref<1x128xf32, #tpu.memory_space<vmem>>, vector<1x128xf32>
    %4 = vector.broadcast %3 : vector<1x128xf32> to vector<64x128xf32>
    %5 = arith.addf %2, %4 : vector<64x128xf32>
    %cst_5 = arith.constant 0.000000e+00 : f32
    %6 = vector.broadcast %cst_5 : f32 to vector<64x128xf32>
    %7 = arith.maximumf %5, %6 : vector<64x128xf32>
    %c0_6 = arith.constant 0 : index
    %c0_7 = arith.constant 0 : index
    %8 = vector.load %arg4[%c0_6, %c0_7] : memref<128x128xf32, #tpu.memory_space<vmem>>, vector<128x128xf32>
    %cst_8 = arith.constant dense<0.000000e+00> : vector<64x128xf32>
    %9 = tpu.matmul %7, %8, %cst_8 {dimension_numbers = #tpu.dot_dimension_numbers<[1], [0], [0], [1], [0, 0, 1, 1], [], []>} : vector<64x128xf32>, vector<128x128xf32>, vector<64x128xf32> -> vector<64x128xf32>
    %c0_9 = arith.constant 0 : index
    %c0_10 = arith.constant 0 : index
    %10 = vector.load %arg5[%c0_9, %c0_10] : memref<1x128xf32, #tpu.memory_space<vmem>>, vector<1x128xf32>
    %11 = vector.broadcast %10 : vector<1x128xf32> to vector<64x128xf32>
    %12 = arith.addf %9, %11 : vector<64x128xf32>
    %cst_11 = arith.constant 0.000000e+00 : f32
    %13 = vector.broadcast %cst_11 : f32 to vector<64x128xf32>
    %14 = arith.maximumf %12, %13 : vector<64x128xf32>
    %c0_12 = arith.constant 0 : index
    %c0_13 = arith.constant 0 : index
    %15 = vector.load %arg6[%c0_12, %c0_13] : memref<128x128xf32, #tpu.memory_space<vmem>>, vector<128x128xf32>
    %cst_14 = arith.constant dense<0.000000e+00> : vector<64x128xf32>
    %16 = tpu.matmul %14, %15, %cst_14 {dimension_numbers = #tpu.dot_dimension_numbers<[1], [0], [0], [1], [0, 0, 1, 1], [], []>} : vector<64x128xf32>, vector<128x128xf32>, vector<64x128xf32> -> vector<64x128xf32>
    %c0_15 = arith.constant 0 : index
    %c0_16 = arith.constant 0 : index
    %17 = vector.load %arg7[%c0_15, %c0_16] : memref<1x128xf32, #tpu.memory_space<vmem>>, vector<1x128xf32>
    %18 = vector.broadcast %17 : vector<1x128xf32> to vector<64x128xf32>
    %19 = arith.addf %16, %18 : vector<64x128xf32>
    %c0_17 = arith.constant 0 : index
    %c0_18 = arith.constant 0 : index
    %20 = vector.load %arg8[%c0_17, %c0_18] : memref<64x128xf32, #tpu.memory_space<vmem>>, vector<64x128xf32>
    tpu.vector_store %arg8[%c0_17, %c0_18], %19 {strides = array<i32>} : memref<64x128xf32, #tpu.memory_space<vmem>>, vector<64x128xf32>,
    return
  }
  func.func @transform_0(%arg0: i32) -> (i32, i32) {
    %c0_i32 = arith.constant 0 : i32
    %c0_i32_0 = arith.constant 0 : i32
    return %arg0, %c0_i32 : i32, i32
  }
  func.func @transform_1(%arg0: i32) -> (i32, i32) {
    %c0_i32 = arith.constant 0 : i32
    %c0_i32_0 = arith.constant 0 : i32
    %c0_i32_1 = arith.constant 0 : i32
    return %c0_i32, %c0_i32_0 : i32, i32
  }
  func.func @transform_2(%arg0: i32) -> (i32, i32) {
    %c0_i32 = arith.constant 0 : i32
    %c0_i32_0 = arith.constant 0 : i32
    %c0_i32_1 = arith.constant 0 : i32
    return %c0_i32, %c0_i32_0 : i32, i32
  }
  func.func @transform_3(%arg0: i32) -> (i32, i32) {
    %c0_i32 = arith.constant 0 : i32
    %c0_i32_0 = arith.constant 0 : i32
    %c0_i32_1 = arith.constant 0 : i32
    return %c0_i32, %c0_i32_0 : i32, i32
  }
  func.func @transform_4(%arg0: i32) -> (i32, i32) {
    %c0_i32 = arith.constant 0 : i32
    %c0_i32_0 = arith.constant 0 : i32
    %c0_i32_1 = arith.constant 0 : i32
    return %c0_i32, %c0_i32_0 : i32, i32
  }
  func.func @transform_5(%arg0: i32) -> (i32, i32) {
    %c0_i32 = arith.constant 0 : i32
    %c0_i32_0 = arith.constant 0 : i32
    %c0_i32_1 = arith.constant 0 : i32
    return %c0_i32, %c0_i32_0 : i32, i32
  }
  func.func @transform_6(%arg0: i32) -> (i32, i32) {
    %c0_i32 = arith.constant 0 : i32
    %c0_i32_0 = arith.constant 0 : i32
    %c0_i32_1 = arith.constant 0 : i32
    return %c0_i32, %c0_i32_0 : i32, i32
  }
  func.func @transform_7(%arg0: i32) -> (i32, i32) {
    %c0_i32 = arith.constant 0 : i32
    %c0_i32_0 = arith.constant 0 : i32
    return %arg0, %c0_i32 : i32, i32
  }
}

module attributes {stable_mosaic.version = 11 : i64} {
  func.func @_mlp_kernel(%arg0: i32, %arg1: memref<64x16xf32, #tpu.memory_space<vmem>>, %arg2: memref<16x128xf32, #tpu.memory_space<vmem>>, %arg3: memref<1x128xf32, #tpu.memory_space<vmem>>, %arg4: memref<128x128xf32, #tpu.memory_space<vmem>>, %arg5: memref<1x128xf32, #tpu.memory_space<vmem>>, %arg6: memref<128x128xf32, #tpu.memory_space<vmem>>, %arg7: memref<1x128xf32, #tpu.memory_space<vmem>>, %arg8: memref<64x128xf32, #tpu.memory_space<vmem>>) attributes {dimension_semantics = [#tpu.dimension_semantics<parallel>], iteration_bounds = array<i64: 4>, scalar_prefetch = 0 : i64, scratch_operands = 0 : i64, tpu.core_type = #tpu.core_type<tc>, window_params = [{transform_indices = @transform_0, window_bounds = array<i64: 64, 16>}, {pipeline_mode = #tpu.pipeline_mode<synchronous>, transform_indices = @transform_1, window_bounds = array<i64: 16, 128>}, {pipeline_mode = #tpu.pipeline_mode<synchronous>, transform_indices = @transform_2, window_bounds = array<i64: 1, 128>}, {pipeline_mode = #tpu.pipeline_mode<synchronous>, transform_indices = @transform_3, window_bounds = array<i64: 128, 128>}, {pipeline_mode = #tpu.pipeline_mode<synchronous>, transform_indices = @transform_4, window_bounds = array<i64: 1, 128>}, {pipeline_mode = #tpu.pipeline_mode<synchronous>, transform_indices = @transform_5, window_bounds = array<i64: 128, 128>}, {pipeline_mode = #tpu.pipeline_mode<synchronous>, transform_indices = @transform_6, window_bounds = array<i64: 1, 128>}, {transform_indices = @transform_7, window_bounds = array<i64: 64, 128>}]} {
    %c0 = arith.constant 0 : index
    %c0_0 = arith.constant 0 : index
    %0 = vector.load %arg1[%c0, %c0_0] : memref<64x16xf32, #tpu.memory_space<vmem>>, vector<64x16xf32>
    %c0_1 = arith.constant 0 : index
    %c0_2 = arith.constant 0 : index
    %1 = vector.load %arg2[%c0_1, %c0_2] : memref<16x128xf32, #tpu.memory_space<vmem>>, vector<16x128xf32>
    %cst = arith.constant dense<0.000000e+00> : vector<64x128xf32>
    %2 = tpu.matmul %0, %1, %cst {dimension_numbers = #tpu.dot_dimension_numbers<[1], [0], [0], [1], [0, 0, 1, 1], [], []>} : vector<64x16xf32>, vector<16x128xf32>, vector<64x128xf32> -> vector<64x128xf32>
    %c0_3 = arith.constant 0 : index
    %c0_4 = arith.constant 0 : index
    %3 = vector.load %arg3[%c0_3, %c0_4] : memref<1x128xf32, #tpu.memory_space<vmem>>, vector<1x128xf32>
    %4 = vector.broadcast %3 : vector<1x128xf32> to vector<64x128xf32>
    %5 = arith.addf %2, %4 : vector<64x128xf32>
    %cst_5 = arith.constant 0.000000e+00 : f32
    %6 = vector.broadcast %cst_5 : f32 to vector<64x128xf32>
    %7 = arith.maximumf %5, %6 : vector<64x128xf32>
    %c0_6 = arith.constant 0 : index
    %c0_7 = arith.constant 0 : index
    %8 = vector.load %arg4[%c0_6, %c0_7] : memref<128x128xf32, #tpu.memory_space<vmem>>, vector<128x128xf32>
    %cst_8 = arith.constant dense<0.000000e+00> : vector<64x128xf32>
    %9 = tpu.matmul %7, %8, %cst_8 {dimension_numbers = #tpu.dot_dimension_numbers<[1], [0], [0], [1], [0, 0, 1, 1], [], []>} : vector<64x128xf32>, vector<128x128xf32>, vector<64x128xf32> -> vector<64x128xf32>
    %c0_9 = arith.constant 0 : index
    %c0_10 = arith.constant 0 : index
    %10 = vector.load %arg5[%c0_9, %c0_10] : memref<1x128xf32, #tpu.memory_space<vmem>>, vector<1x128xf32>
    %11 = vector.broadcast %10 : vector<1x128xf32> to vector<64x128xf32>
    %12 = arith.addf %9, %11 : vector<64x128xf32>
    %cst_11 = arith.constant 0.000000e+00 : f32
    %13 = vector.broadcast %cst_11 : f32 to vector<64x128xf32>
    %14 = arith.maximumf %12, %13 : vector<64x128xf32>
    %c0_12 = arith.constant 0 : index
    %c0_13 = arith.constant 0 : index
    %15 = vector.load %arg6[%c0_12, %c0_13] : memref<128x128xf32, #tpu.memory_space<vmem>>, vector<128x128xf32>
    %cst_14 = arith.constant dense<0.000000e+00> : vector<64x128xf32>
    %16 = tpu.matmul %14, %15, %cst_14 {dimension_numbers = #tpu.dot_dimension_numbers<[1], [0], [0], [1], [0, 0, 1, 1], [], []>} : vector<64x128xf32>, vector<128x128xf32>, vector<64x128xf32> -> vector<64x128xf32>
    %c0_15 = arith.constant 0 : index
    %c0_16 = arith.constant 0 : index
    %17 = vector.load %arg7[%c0_15, %c0_16] : memref<1x128xf32, #tpu.memory_space<vmem>>, vector<1x128xf32>
    %18 = vector.broadcast %17 : vector<1x128xf32> to vector<64x128xf32>
    %19 = arith.addf %16, %18 : vector<64x128xf32>
    %c0_17 = arith.constant 0 : index
    %c0_18 = arith.constant 0 : index
    %20 = vector.load %arg8[%c0_17, %c0_18] : memref<64x128xf32, #tpu.memory_space<vmem>>, vector<64x128xf32>
    tpu.vector_store %arg8[%c0_17, %c0_18], %19 {strides = array<i32>} : memref<64x128xf32, #tpu.memory_space<vmem>>, vector<64x128xf32>,
    return
  }
  func.func @transform_0(%arg0: i32) -> (i32, i32) {
    %c0_i32 = arith.constant 0 : i32
    %c0_i32_0 = arith.constant 0 : i32
    return %arg0, %c0_i32 : i32, i32
  }
  func.func @transform_1(%arg0: i32) -> (i32, i32) {
    %c0_i32 = arith.constant 0 : i32
    %c0_i32_0 = arith.constant 0 : i32
    %c0_i32_1 = arith.constant 0 : i32
    return %c0_i32, %c0_i32_0 : i32, i32
  }
  func.func @transform_2(%arg0: i32) -> (i32, i32) {
    %c0_i32 = arith.constant 0 : i32
    %c0_i32_0 = arith.constant 0 : i32
    %c0_i32_1 = arith.constant 0 : i32
    return %c0_i32, %c0_i32_0 : i32, i32
  }
  func.func @transform_3(%arg0: i32) -> (i32, i32) {
    %c0_i32 = arith.constant 0 : i32
    %c0_i32_0 = arith.constant 0 : i32
    %c0_i32_1 = arith.constant 0 : i32
    return %c0_i32, %c0_i32_0 : i32, i32
  }
  func.func @transform_4(%arg0: i32) -> (i32, i32) {
    %c0_i32 = arith.constant 0 : i32
    %c0_i32_0 = arith.constant 0 : i32
    %c0_i32_1 = arith.constant 0 : i32
    return %c0_i32, %c0_i32_0 : i32, i32
  }
  func.func @transform_5(%arg0: i32) -> (i32, i32) {
    %c0_i32 = arith.constant 0 : i32
    %c0_i32_0 = arith.constant 0 : i32
    %c0_i32_1 = arith.constant 0 : i32
    return %c0_i32, %c0_i32_0 : i32, i32
  }
  func.func @transform_6(%arg0: i32) -> (i32, i32) {
    %c0_i32 = arith.constant 0 : i32
    %c0_i32_0 = arith.constant 0 : i32
    %c0_i32_1 = arith.constant 0 : i32
    return %c0_i32, %c0_i32_0 : i32, i32
  }
  func.func @transform_7(%arg0: i32) -> (i32, i32) {
    %c0_i32 = arith.constant 0 : i32
    %c0_i32_0 = arith.constant 0 : i32
    return %arg0, %c0_i32 : i32, i32
  }
}

</mosaic_0001>

<bundles_post_ra>
// kernel: tpu_custom_call.1
= control target key start
LH: loop header
LB: loop body
LE: loop exit
PB: predicated region body
PF: predicated region fallthrough
CT: control target
= control target key end

     0   :  { %12 = vsyncpa [#allocation3], 0  ;;  %s1410_s0 = inlined_call_operand.vmem [shape: f32[256,16], index: 0, kind: input, shape index: {}]   ;;  %s1411_s1 = inlined_call_operand.vmem [shape: f32[16,128], index: 1, kind: input, shape index: {}]   ;;  %s1412_s2 = inlined_call_operand.vmem [shape: f32[1,128], index: 2, kind: input, shape index: {}]   ;;  %s1413_s3 = inlined_call_operand.vmem [shape: f32[128,128], index: 3, kind: input, shape index: {}]   ;;  %s1414_s4 = inlined_call_operand.vmem [shape: f32[1,128], index: 4, kind: input, shape index: {}]   ;;  %s1415_s5 = inlined_call_operand.vmem [shape: f32[128,128], index: 5, kind: input, shape index: {}]   ;;  %s1416_s6 = inlined_call_operand.vmem [shape: f32[1,128], index: 6, kind: input, shape index: {}]   ;;  %s1417_s7 = inlined_call_operand.hbm [shape: f32[256,128], index: 7, kind: output, shape index: {}]  }
   0x1   :  { %14 = vsyncpa [#allocation3 + $0x1], 0  ;;  %s1185_s24 = smov 0   ;;  %s1187_s25 = smov 0  }
   0x2   :  { %s1189_s26 = smov 0   ;;  %s1191_s27 = smov 0  }
   0x3 LB: > { %s1206_s28 = sadd.s32 4294967295, %s1140_s27   ;;  %s783_s29 = sadd.s32 4294967294, %s1140_s27   ;;  %s1140_s27 = sphi %s1191_s27, %s1423_s27   ;;  %s1136_s26 = sphi %s1189_s26, %s1422_s26   ;;  %s1132_s25 = sphi %s1187_s25, %s1421_s25   ;;  %s1128_s24 = sphi %s1185_s24, %s1420_s24  }
   0x4   : > { %s1210_s30 = sadd.s32 1, %s1140_s27   ;;  %s179_s8 = sadd.s32 1, %s1136_s26 }
   0x5   : > { %s176_s9 = ssub.s32 %s1140_s27, %s1210_s30  ;;  %p189_p0 = scmp.ne.s32.totalorder %s1136_s26, %s1132_s25 }
   0x6   : > { %p177_p1 = scmp.eq.s32.totalorder %s176_s9, 0  ;;  %p190_p2 = scmp.eq.s32.totalorder %s1206_s28, 3 }
   0x7   : > { %p195_p3 = scmp.ne.s32.totalorder %s1132_s25, %s1128_s24  ;;  %p196_p4 = scmp.eq.s32.totalorder %s783_s29, 3 }
   0x8   : > { %s1221_s10 = scalar_select %p177_p1, %s1136_s26, %s179_s8  }
   0x9   : > { %p1223_p5 = por %p190_p2, %p189_p0  ;;  %p1227_p6 = por %p196_p4, %p195_p3 }
   0xa   : > { %p786_p7 = scmp.ge.s32.totalorder %s1140_s27, 1  ;;  %p241_p8 = scmp.lt.s32.totalorder %s1140_s27, 5 }
   0xc   : > { %p242_p9 = pnand %p786_p7, %p241_p8 }
   0xd   : > { %v288_v0 = vld [vmem:[%s1411_s1] sm:$0xff] (!%p242_p9)  ;;  %v289_v1 = vld [vmem:[%s1411_s1 + $0x8] sm:$0xff] (!%p242_p9)  ;;  %s788_s17 = sshll.u32 (!%p242_p9), %s1206_s28, 3  ;;  %v437_v5 = vld [vmem:[%s1413_s3 + $0x10] sm:$0xff] (!%p242_p9)  ;;  %vm297_vm0 = vcmask (!%p242_p9), 130048   ;;  %s270_s22 = sand.u32 (!%p242_p9), 1, %s1132_s25  }
   0xe   : > { %245 = sbr.rel (%p242_p9) target bundleno = 704 (0x2c0), region = 48  ;;  %v435_v2 = vld [vmem:[%s1413_s3] sm:$0xff] (!%p242_p9)  ;;  %v969_v3 = vpack.c.bf16 (!%p242_p9), %v289_v1, %v288_v0  ;;  %p274_p10 = scmp.lt.s32.totalorder (!%p242_p9), %s788_s17, 31  ;;  %v436_v4 = vld [vmem:[%s1413_s3 + $0x8] sm:$0xff] (!%p242_p9)  ;;  %v438_v6 = vld [vmem:[%s1413_s3 + $0x18] sm:$0xff] (!%p242_p9) }
   0xf   : > { %v973_v7 = vpack.c.bf16 (!%p242_p9), %v436_v4, %v435_v2  ;;  %v977_v8 = vpack.c.bf16 (!%p242_p9), %v438_v6, %v437_v5  ;;  %v439_v9 = vld [vmem:[%s1413_s3 + $0x20] sm:$0xff] (!%p242_p9)  ;;  %v440_v10 = vld [vmem:[%s1413_s3 + $0x28] sm:$0xff] (!%p242_p9)  ;;  %v441_v12 = vld [vmem:[%s1413_s3 + $0x30] sm:$0xff] (!%p242_p9)  ;;  %s787_s23 = sshll.u32 (!%p242_p9), %s270_s22, 6  ;;  %s806_s8 = sshll.u32 (!%p242_p9), %s1206_s28, 10 }
  0x10   : > { %970 = vmatprep.subr.bf16.mxu0 (!%p242_p9), %v969_v3  ;;  %v981_v11 = vpack.c.bf16 (!%p242_p9), %v440_v10, %v439_v9  ;;  %v442_v13 = vld [vmem:[%s1413_s3 + $0x38] sm:$0xff] (!%p242_p9)  ;;  %v443_v20 = vld [vmem:[%s1413_s3 + $0x40] sm:$0xff] (!%p242_p9)  ;;  %v444_v21 = vld [vmem:[%s1413_s3 + $0x48] sm:$0xff] (!%p242_p9)  ;;  %s1363_s15 = scalar_lea.hbm (!%p242_p9), %s1417_s7, %s806_s8  ;;  %s1369_s28 = scalar_lea.sflag (!%p242_p9), [#allocation3], %s270_s22 }
  0x11   : > { %972 = vmatpush3.bf16.msra.mxu0 (!%p242_p9), %v969_v3  ;;  %974 = vmatprep.subr.bf16.mxu1 (!%p242_p9), %v973_v7  ;;  %v985_v18 = vpack.c.bf16 (!%p242_p9), %v442_v13, %v441_v12  ;;  %v989_v23 = vpack.c.bf16 (!%p242_p9), %v444_v21, %v443_v20  ;;  %v445_v25 = vld [vmem:[%s1413_s3 + $0x50] sm:$0xff] (!%p242_p9)  ;;  %v446_v26 = vld [vmem:[%s1413_s3 + $0x58] sm:$0xff] (!%p242_p9)  ;;  %v447_v29 = vld [vmem:[%s1413_s3 + $0x60] sm:$0xff] (!%p242_p9)  ;;  %s1142_s18 = smov (!%p242_p9), [#allocation2]  }
  0x12   : > { %976 = vmatpush3.bf16.msra.mxu1 (!%p242_p9), %v973_v7  ;;  %v993_v28 = vpack.c.bf16 (!%p242_p9), %v446_v26, %v445_v25  ;;  %v448_v30 = vld [vmem:[%s1413_s3 + $0x68] sm:$0xff] (!%p242_p9)  ;;  %v449_v32 = vld [vmem:[%s1413_s3 + $0x70] sm:$0xff] (!%p242_p9)  ;;  %v450_v33 = vld [vmem:[%s1413_s3 + $0x78] sm:$0xff] (!%p242_p9)  ;;  %s1082_s19 = sshll.u32 (!%p242_p9), %s1142_s18, 4  ;;  %s1083_s19 = int_to_ptr.vmem [resolvable:$false] %s1082_s19 }
  0x13   : > { %978 = vmatprep.subr.bf16.mxu1 (!%p242_p9), %v977_v8  ;;  %v997_v31 = vpack.c.bf16 (!%p242_p9), %v448_v30, %v447_v29  ;;  %v1001_v34 = vpack.c.bf16 (!%p242_p9), %v450_v33, %v449_v32  ;;  %v571_v35 = vld [vmem:[%s1415_s5] sm:$0xff] (!%p242_p9)  ;;  %v572_v36 = vld [vmem:[%s1415_s5 + $0x8] sm:$0xff] (!%p242_p9)  ;;  %v573_v37 = vld [vmem:[%s1415_s5 + $0x10] sm:$0xff] (!%p242_p9)  ;;  %s1084_s21 = scalar_lea.vmem (!%p242_p9), %s1083_s19, 2048 }
  0x14   : > { %v1005_v38 = vpack.c.bf16 (!%p242_p9), %v572_v36, %v571_v35  ;;  %v574_v39 = vld [vmem:[%s1415_s5 + $0x18] sm:$0xff] (!%p242_p9)  ;;  %v575_v41 = vld [vmem:[%s1415_s5 + $0x20] sm:$0xff] (!%p242_p9)  ;;  %v576_v42 = vld [vmem:[%s1415_s5 + $0x28] sm:$0xff] (!%p242_p9) }
  0x15   : > { %s1425_s17 = smov (!%p274_p10, %s788_s17), 31  ;;  %v1009_v40 = vpack.c.bf16 %v574_v39, %v573_v37  ;;  %v1013_v43 = vpack.c.bf16 %v576_v42, %v575_v41  ;;  %v577_v44 = vld [vmem:[%s1415_s5 + $0x30] sm:$0xff]  ;;  %v578_v45 = vld [vmem:[%s1415_s5 + $0x38] sm:$0xff]  ;;  %v579_v47 = vld [vmem:[%s1415_s5 + $0x40] sm:$0xff] }
  0x16   : > { %s789_s16 = sshll.u32 %s1425_s17, 3  ;;  %980 = vmatpush3.bf16.msra.mxu1 %v977_v8  ;;  %1006 = vmatprep.subr.bf16.mxu0 %v1005_v38  ;;  %v1017_v46 = vpack.c.bf16 %v578_v45, %v577_v44  ;;  %v580_v48 = vld [vmem:[%s1415_s5 + $0x48] sm:$0xff]  ;;  %v581_v50 = vld [vmem:[%s1415_s5 + $0x50] sm:$0xff]  ;;  %v582_v51 = vld [vmem:[%s1415_s5 + $0x58] sm:$0xff]  ;;  %s272_s17 = scalar_lea.vmem [#allocation2], %s787_s23 }
  0x17   : > { %s277_s20 = scalar_lea.vmem %s1410_s0, %s789_s16  ;;  %982 = vmatprep.subr.bf16.mxu1 %v981_v11  ;;  %v1021_v49 = vpack.c.bf16 %v580_v48, %v579_v47  ;;  %v1025_v52 = vpack.c.bf16 %v582_v51, %v581_v50  ;;  %v583_v53 = vld [vmem:[%s1415_s5 + $0x60] sm:$0xff]  ;;  %v584_v54 = vld [vmem:[%s1415_s5 + $0x68] sm:$0xff]  ;;  %s721_s9 = sshll.u32 %s272_s17, 4  ;;  %s1365_s9 = int_to_ptr.vmem [resolvable:$true] %s721_s9 }
  0x18   : > { %v280_v14 = vld [vmem:[%s277_s20] sm:$0xff]  ;;  %v281_v15 = vld [vmem:[%s277_s20 + $0x8] sm:$0xff]  ;;  %v282_v16 = vld [vmem:[%s277_s20 + $0x10] sm:$0xff]  ;;  %v1029_v55 = vpack.c.bf16 %v584_v54, %v583_v53  ;;  %s1078_s16 = scalar_lea.vmem %s1365_s9, 1024  ;;  %p1085_p0 = scmp.lt.s32.totalorder %s1365_s9, %s1083_s19 }
  0x19   : > { %869 = vmatprep.mubr.msk.f32.mxu0 %vm297_vm0, %v280_v14  ;;  %v283_v17 = vld [vmem:[%s277_s20 + $0x18] sm:$0xff]  ;;  %v284_v19 = vld [vmem:[%s277_s20 + $0x20] sm:$0xff]  ;;  %v285_v22 = vld [vmem:[%s277_s20 + $0x28] sm:$0xff]  ;;  %p1079_p11 = scmp.ne.s32.totalorder %s1365_s9, %s1078_s16  ;;  %p1086_p1 = scmp.lt.s32.totalorder %s1084_s21, %s1078_s16 }
  0x1a   : > { %870 = vmatmul.mubr.msk.f32.vlgmr.msra.gmra.mrb[0].mxu0 %vm297_vm0, %v281_v15  ;;  %984 = vmatpush3.bf16.msra.mxu1 %v981_v11  ;;  %v286_v24 = vld [vmem:[%s277_s20 + $0x30] sm:$0xff]  ;;  %v287_v27 = vld [vmem:[%s277_s20 + $0x38] sm:$0xff]  ;;  %v790_v56 = vld [vmem:[%s1412_s2] ss:$0 sm:$0xff] }
  0x1b   : > { %872 = vmatprep.mubr.msk.f32.mxu0 %vm297_vm0, %v282_v16  ;;  %986 = vmatprep.subr.bf16.mxu1 %v985_v18  ;;  %v799_v20 = vld [vmem:[%s1414_s4] ss:$0 sm:$0xff]  ;;  %p1080_p12 = pnand %p1079_p11, %p1223_p5  ;;  %p1087_p2 = por %p1086_p1, %p1085_p0 }
  0x1c   : > { %1008 = vmatpush3.bf16.msra.mxu0 %v1005_v38  ;;  %v800_v45 = vld [vmem:[%s1416_s6] ss:$0 sm:$0xff] }
  0x1d   : > { %1010 = vmatprep.subr.bf16.mxu0 %v1009_v40  ;;  %p1081_p13 = pneg %p1080_p12 }
  0x1e   : > { %873 = vmatmul.mubr.msk.f32.gmra.mrb[2].mxu0 %vm297_vm0, %v283_v17  ;;  %988 = vmatpush3.bf16.msra.mxu1 %v985_v18  ;;  %v585_v17 = vld [vmem:[%s1415_s5 + $0x70] sm:$0xff]  ;;  %v586_v18 = vld [vmem:[%s1415_s5 + $0x78] sm:$0xff] }
  0x1f   : > { %875 = vmatprep.mubr.msk.f32.mxu0 %vm297_vm0, %v284_v19  ;;  %990 = vmatprep.subr.bf16.mxu1 %v989_v23  ;;  %v1033_v19 = vpack.c.bf16 %v586_v18, %v585_v17  ;;  %p1088_p3 = pnand %p1087_p2, %p1081_p13 }
  0x20   : > { %1012 = vmatpush3.bf16.msra.mxu0 %v1009_v40 }
  0x21   : > { %1014 = vmatprep.subr.bf16.mxu0 %v1013_v43 }
  0x22   : > { %876 = vmatmul.mubr.msk.f32.gmra.mrb[4].mxu0 %vm297_vm0, %v285_v22  ;;  %992 = vmatpush3.bf16.msra.mxu1 %v989_v23 }
  0x23   : > { %878 = vmatprep.mubr.msk.f32.mxu0 %vm297_vm0, %v286_v24  ;;  %994 = vmatprep.subr.bf16.mxu1 %v993_v28 }
  0x24   : > { %1016 = vmatpush3.bf16.msra.mxu0 %v1013_v43 }
  0x25   : > { %1018 = vmatprep.subr.bf16.mxu0 %v1017_v46 }
  0x26   : > { %879 = vmatmul.mubr.msk.f32.gmra.mrb[6].mxu0 %vm297_vm0, %v287_v27  ;;  %996 = vmatpush3.bf16.msra.mxu1 %v993_v28 }
  0x27   : > { %998 = vmatprep.subr.bf16.mxu1 %v997_v31 }
  0x28   : > { %1020 = vmatpush3.bf16.msra.mxu0 %v1017_v46 }
  0x29   : > { %1022 = vmatprep.subr.bf16.mxu0 %v1021_v49 }
  0x2a   : > { %1000 = vmatpush3.bf16.msra.mxu1 %v997_v31 }
  0x2b   : > { %1002 = vmatprep.subr.bf16.mxu1 %v1001_v34 }
  0x2c   : > { %1024 = vmatpush3.bf16.msra.mxu0 %v1021_v49 }
  0x2d   : > { %1026 = vmatprep.subr.bf16.mxu0 %v1025_v52 }
  0x2e   : > { %1004 = vmatpush3.bf16.msra.mxu1 %v1001_v34 }
  0x30   : > { %1028 = vmatpush3.bf16.msra.mxu0 %v1025_v52 }
  0x31   : > { %1030 = vmatprep.subr.bf16.mxu0 %v1029_v55 }
  0x34   : > { %1032 = vmatpush3.bf16.msra.mxu0 %v1029_v55 }
  0x35   : > { %1034 = vmatprep.subr.bf16.mxu0 %v1033_v19 }
  0x38   : > { %1036 = vmatpush3.bf16.msra.mxu0 %v1033_v19 }
  0xed   : > { %v871_v57 = vpop.f32.mrb[0].mxu0 }
  0xee   : > { %v394_v58 = vadd.f32 %v871_v57, %v790_v56  ;;  %v388_v59 = vpop.f32.mrb[1].mxu0 }
  0xef   : > { %v389_v60 = vadd.f32 %v790_v56, %v388_v59 }
  0xf0   : > { %v428_v63 = vmax.f32 %v394_v58, 0.0 }
  0xf1   : > { %v874_v61 = vpop.f32.mrb[2].mxu0  ;;  %v427_v62 = vmax.f32 %v389_v60, 0.0 }
  0xf2   : > { %v404_v0 = vadd.f32 %v874_v61, %v790_v56  ;;  %v398_v1 = vpop.f32.mrb[3].mxu0 }
  0xf3   : > { %v399_v2 = vadd.f32 %v790_v56, %v398_v1  ;;  %913 = vmatprep.mubr.f32.mxu1 %v427_v62 }
  0xf4   : > { %914 = vmatmul.mubr.f32.vlgmr.msra.gmra.mrb[0].mxu1 %v428_v63  ;;  %v430_v5 = vmax.f32 %v404_v0, 0.0 }
  0xf5   : > { %v429_v3 = vmax.f32 %v399_v2, 0.0  ;;  %v877_v4 = vpop.f32.mrb[4].mxu0 }
  0xf6   : > { %v414_v6 = vadd.f32 %v877_v4, %v790_v56  ;;  %v408_v7 = vpop.f32.mrb[5].mxu0 }
  0xf7   : > { %v409_v8 = vadd.f32 %v790_v56, %v408_v7  ;;  %916 = vmatprep.mubr.f32.mxu1 %v429_v3 }
  0xf8   : > { %917 = vmatmul.mubr.f32.gmra.mrb[2].mxu1 %v430_v5  ;;  %v432_v11 = vmax.f32 %v414_v6, 0.0 }
  0xf9   : > { %v431_v9 = vmax.f32 %v409_v8, 0.0  ;;  %v880_v10 = vpop.f32.mrb[6].mxu0 }
  0xfa   : > { %v424_v12 = vadd.f32 %v880_v10, %v790_v56  ;;  %v418_v13 = vpop.f32.mrb[7].mxu0 }
  0xfb   : > { %v419_v14 = vadd.f32 %v790_v56, %v418_v13  ;;  %919 = vmatprep.mubr.f32.mxu1 %v431_v9 }
  0xfc   : > { %920 = vmatmul.mubr.f32.gmra.mrb[4].mxu1 %v432_v11  ;;  %v434_v16 = vmax.f32 %v424_v12, 0.0 }
  0xfd   : > { %v433_v15 = vmax.f32 %v419_v14, 0.0 }
  0xff   : > { %922 = vmatprep.mubr.f32.mxu1 %v433_v15 }
 0x100   : > { %923 = vmatmul.mubr.f32.gmra.mrb[6].mxu1 %v434_v16 }
 0x1c7   : > { %v915_v21 = vpop.f32.mrb[0].mxu1 }
 0x1c8   : > { %v530_v22 = vadd.f32 %v915_v21, %v799_v20  ;;  %v524_v23 = vpop.f32.mrb[1].mxu1 }
 0x1c9   : > { %v525_v24 = vadd.f32 %v799_v20, %v524_v23 }
 0x1ca   : > { %v564_v27 = vmax.f32 %v530_v22, 0.0 }
 0x1cb   : > { %v563_v25 = vmax.f32 %v525_v24, 0.0  ;;  %v918_v26 = vpop.f32.mrb[2].mxu1 }
 0x1cc   : > { %v540_v28 = vadd.f32 %v918_v26, %v799_v20  ;;  %v534_v29 = vpop.f32.mrb[3].mxu1 }
 0x1cd   : > { %v535_v30 = vadd.f32 %v799_v20, %v534_v29  ;;  %957 = vmatprep.mubr.f32.mxu0 %v563_v25 }
 0x1ce   : > { %958 = vmatmul.mubr.f32.vlgmr.msra.gmra.mrb[8].mxu0 %v564_v27  ;;  %v566_v33 = vmax.f32 %v540_v28, 0.0 }
 0x1cf   : > { %v565_v31 = vmax.f32 %v535_v30, 0.0  ;;  %v921_v32 = vpop.f32.mrb[4].mxu1 }
 0x1d0   : > { %v550_v34 = vadd.f32 %v921_v32, %v799_v20  ;;  %v544_v35 = vpop.f32.mrb[5].mxu1 }
 0x1d1   : > { %v545_v36 = vadd.f32 %v799_v20, %v544_v35  ;;  %960 = vmatprep.mubr.f32.mxu0 %v565_v31 }
 0x1d2   : > { %961 = vmatmul.mubr.f32.gmra.mrb[10].mxu0 %v566_v33  ;;  %v568_v39 = vmax.f32 %v550_v34, 0.0 }
 0x1d3   : > { %v567_v37 = vmax.f32 %v545_v36, 0.0  ;;  %v924_v38 = vpop.f32.mrb[6].mxu1 }
 0x1d4   : > { %v560_v40 = vadd.f32 %v924_v38, %v799_v20  ;;  %v554_v41 = vpop.f32.mrb[7].mxu1 }
 0x1d5   : > { %v555_v42 = vadd.f32 %v799_v20, %v554_v41  ;;  %963 = vmatprep.mubr.f32.mxu0 %v567_v37 }
 0x1d6   : > { %964 = vmatmul.mubr.f32.gmra.mrb[12].mxu0 %v568_v39  ;;  %v570_v44 = vmax.f32 %v560_v40, 0.0 }
 0x1d7   : > { %v569_v43 = vmax.f32 %v555_v42, 0.0 }
 0x1d9   : > { %966 = vmatprep.mubr.f32.mxu0 %v569_v43 }
 0x1da   : > { %967 = vmatmul.mubr.f32.gmra.mrb[14].mxu0 %v570_v44 }
 0x2a1   : > { %v959_v46 = vpop.f32.mrb[8].mxu0 }
 0x2a2   : > { %v666_v47 = vadd.f32 %v959_v46, %v800_v45  ;;  %v660_v48 = vpop.f32.mrb[9].mxu0 }
 0x2a3   : > { %v661_v49 = vadd.f32 %v800_v45, %v660_v48 }
 0x2a4   : > { %700 = vst [vmem:[%s272_s17 + $0x8] sm:$0xff] %v666_v47 }
 0x2a5   : > { %699 = vst [vmem:[%s272_s17] sm:$0xff] %v661_v49  ;;  %v962_v50 = vpop.f32.mrb[10].mxu0 }
 0x2a6   : > { %v676_v51 = vadd.f32 %v962_v50, %v800_v45  ;;  %v670_v52 = vpop.f32.mrb[11].mxu0 }
 0x2a7   : > { %v671_v53 = vadd.f32 %v800_v45, %v670_v52 }
 0x2a8   : > { %702 = vst [vmem:[%s272_s17 + $0x18] sm:$0xff] %v676_v51 }
 0x2a9   : > { %701 = vst [vmem:[%s272_s17 + $0x10] sm:$0xff] %v671_v53  ;;  %v965_v54 = vpop.f32.mrb[12].mxu0 }
 0x2aa   : > { %v686_v55 = vadd.f32 %v965_v54, %v800_v45  ;;  %v680_v56 = vpop.f32.mrb[13].mxu0 }
 0x2ab   : > { %v681_v57 = vadd.f32 %v800_v45, %v680_v56 }
 0x2ac   : > { %704 = vst [vmem:[%s272_s17 + $0x28] sm:$0xff] %v686_v55 }
 0x2ad   : > { %703 = vst [vmem:[%s272_s17 + $0x20] sm:$0xff] %v681_v57  ;;  %v968_v58 = vpop.f32.mrb[14].mxu0 }
 0x2ae   : > { %v696_v59 = vadd.f32 %v968_v58, %v800_v45  ;;  %v690_v60 = vpop.f32.mrb[15].mxu0 }
 0x2af   : > { %v691_v61 = vadd.f32 %v800_v45, %v690_v60 }
 0x2b0   : > { %706 = vst [vmem:[%s272_s17 + $0x38] sm:$0xff] %v696_v59 }
 0x2b1   : > { %705 = vst [vmem:[%s272_s17 + $0x30] sm:$0xff] %v691_v61 }
 0x2b2   : > { %1091 = shalt.err (!%p1088_p3)
}
 0x2b3   : > { %s1092_s22 = scalar_lea.hbm %s1363_s15, 1024  ;;  %s1096_s20 = scalar_lea.hbm %s1417_s7, 4096 }
 0x2b4   : > { %p1093_p4 = scmp.ne.s32.totalorder %s1363_s15, %s1092_s22  ;;  %p1097_p9 = scmp.lt.u32.totalorder %s1363_s15, %s1417_s7 }
 0x2b5   : > { %p1098_p10 = scmp.lt.u32.totalorder %s1096_s20, %s1092_s22  ;;  %p1100_p12 = scmp.lt.u32.totalorder %s1092_s22, %s1363_s15 }
 0x2b6   : > { %p1094_p7 = pnand %p1093_p4, %p1223_p5 }
 0x2b7   : > { %p1099_p11 = por %p1098_p10, %p1097_p9 }
 0x2b8   : > { %p1095_p8 = pneg %p1094_p7 }
 0x2b9   : > { %p1101_p13 = por %p1100_p12, %p1099_p11 }
 0x2bb   : > { %p1102_p0 = pnand %p1101_p13, %p1095_p8 }
 0x2bd   : > { %1105 = shalt.err (!%p1102_p0)
}
 0x2be   : > { %s1143_s13 = smov 128   ;;  %s1144_s14 = smov 8  }
 0x2bf   : > { %1037 = dma.vmem_to_hbm [thread:$0]  (%p1223_p5), %s1365_s9, 1024, %s1363_s15, %s1369_s28, %s1143_s13, %s1143_s13, %s1144_s14  }
 0x2c0 PF: > { %p1043_p1 = scmp.ge.s32.totalorder %s1140_s27, 2  ;;  %s736_s16 = sand.u32 1, %s1128_s24  }
 0x2c1   : > { %s737_s18 = scalar_lea.sflag [#allocation3], %s736_s16 }
 0x2c2   : > { %p1040_p2 = pnand %p1043_p1, %p1227_p6 }
 0x2c4   : > { %1123 = dma.done.wait (!%p1040_p2), %s737_s18, 1024  }
 0x2c5   : > { %1125 = vsyncadd (!%p1040_p2), %s737_s18, 4294966272  ;;  %p17_p3 = scmp.ge.s32.totalorder %s1210_s30, 6   ;;  %s1420_s24 = smov %s1132_s25 }
 0x2c6   : > { %s1421_s25 = smov %s1136_s26  ;;  %s1422_s26 = smov %s1221_s10 }
 0x2c7   : > { %s1423_s27 = smov %s1210_s30  ;;  %19 = sbr.rel (!%p17_p3) target bundleno = 3 (0x3), region = 83 }
 0x2ce   :  { %742 = vsyncpa [#allocation3], 1 }
 0x2cf   :  { %744 = vsyncpa [#allocation3 + $0x1], 1 }

// kernel: tpu_custom_call.1
= control target key start
LH: loop header
LB: loop body
LE: loop exit
PB: predicated region body
PF: predicated region fallthrough
CT: control target
= control target key end

     0   :  { %12 = vsyncpa [#allocation3], 0  ;;  %s1410_s0 = inlined_call_operand.vmem [shape: f32[256,16], index: 0, kind: input, shape index: {}]   ;;  %s1411_s1 = inlined_call_operand.vmem [shape: f32[16,128], index: 1, kind: input, shape index: {}]   ;;  %s1412_s2 = inlined_call_operand.vmem [shape: f32[1,128], index: 2, kind: input, shape index: {}]   ;;  %s1413_s3 = inlined_call_operand.vmem [shape: f32[128,128], index: 3, kind: input, shape index: {}]   ;;  %s1414_s4 = inlined_call_operand.vmem [shape: f32[1,128], index: 4, kind: input, shape index: {}]   ;;  %s1415_s5 = inlined_call_operand.vmem [shape: f32[128,128], index: 5, kind: input, shape index: {}]   ;;  %s1416_s6 = inlined_call_operand.vmem [shape: f32[1,128], index: 6, kind: input, shape index: {}]   ;;  %s1417_s7 = inlined_call_operand.hbm [shape: f32[256,128], index: 7, kind: output, shape index: {}]  }
   0x1   :  { %14 = vsyncpa [#allocation3 + $0x1], 0  ;;  %s1185_s24 = smov 0   ;;  %s1187_s25 = smov 0  }
   0x2   :  { %s1189_s26 = smov 0   ;;  %s1191_s27 = smov 0  }
   0x3 LB: > { %s1206_s28 = sadd.s32 4294967295, %s1140_s27   ;;  %s783_s29 = sadd.s32 4294967294, %s1140_s27   ;;  %s1140_s27 = sphi %s1191_s27, %s1423_s27   ;;  %s1136_s26 = sphi %s1189_s26, %s1422_s26   ;;  %s1132_s25 = sphi %s1187_s25, %s1421_s25   ;;  %s1128_s24 = sphi %s1185_s24, %s1420_s24  }
   0x4   : > { %s1210_s30 = sadd.s32 1, %s1140_s27   ;;  %s179_s8 = sadd.s32 1, %s1136_s26 }
   0x5   : > { %s176_s9 = ssub.s32 %s1140_s27, %s1210_s30  ;;  %p189_p0 = scmp.ne.s32.totalorder %s1136_s26, %s1132_s25 }
   0x6   : > { %p177_p1 = scmp.eq.s32.totalorder %s176_s9, 0  ;;  %p190_p2 = scmp.eq.s32.totalorder %s1206_s28, 3 }
   0x7   : > { %p195_p3 = scmp.ne.s32.totalorder %s1132_s25, %s1128_s24  ;;  %p196_p4 = scmp.eq.s32.totalorder %s783_s29, 3 }
   0x8   : > { %s1221_s10 = scalar_select %p177_p1, %s1136_s26, %s179_s8  }
   0x9   : > { %p1223_p5 = por %p190_p2, %p189_p0  ;;  %p1227_p6 = por %p196_p4, %p195_p3 }
   0xa   : > { %p786_p7 = scmp.ge.s32.totalorder %s1140_s27, 1  ;;  %p241_p8 = scmp.lt.s32.totalorder %s1140_s27, 5 }
   0xc   : > { %p242_p9 = pnand %p786_p7, %p241_p8 }
   0xd   : > { %v288_v0 = vld [vmem:[%s1411_s1] sm:$0xff] (!%p242_p9)  ;;  %v289_v1 = vld [vmem:[%s1411_s1 + $0x8] sm:$0xff] (!%p242_p9)  ;;  %s788_s17 = sshll.u32 (!%p242_p9), %s1206_s28, 3  ;;  %v437_v5 = vld [vmem:[%s1413_s3 + $0x10] sm:$0xff] (!%p242_p9)  ;;  %vm297_vm0 = vcmask (!%p242_p9), 130048   ;;  %s270_s22 = sand.u32 (!%p242_p9), 1, %s1132_s25  }
   0xe   : > { %245 = sbr.rel (%p242_p9) target bundleno = 704 (0x2c0), region = 48  ;;  %v435_v2 = vld [vmem:[%s1413_s3] sm:$0xff] (!%p242_p9)  ;;  %v969_v3 = vpack.c.bf16 (!%p242_p9), %v289_v1, %v288_v0  ;;  %p274_p10 = scmp.lt.s32.totalorder (!%p242_p9), %s788_s17, 31  ;;  %v436_v4 = vld [vmem:[%s1413_s3 + $0x8] sm:$0xff] (!%p242_p9)  ;;  %v438_v6 = vld [vmem:[%s1413_s3 + $0x18] sm:$0xff] (!%p242_p9) }
   0xf   : > { %v973_v7 = vpack.c.bf16 (!%p242_p9), %v436_v4, %v435_v2  ;;  %v977_v8 = vpack.c.bf16 (!%p242_p9), %v438_v6, %v437_v5  ;;  %v439_v9 = vld [vmem:[%s1413_s3 + $0x20] sm:$0xff] (!%p242_p9)  ;;  %v440_v10 = vld [vmem:[%s1413_s3 + $0x28] sm:$0xff] (!%p242_p9)  ;;  %v441_v12 = vld [vmem:[%s1413_s3 + $0x30] sm:$0xff] (!%p242_p9)  ;;  %s787_s23 = sshll.u32 (!%p242_p9), %s270_s22, 6  ;;  %s806_s8 = sshll.u32 (!%p242_p9), %s1206_s28, 10 }
  0x10   : > { %970 = vmatprep.subr.bf16.mxu0 (!%p242_p9), %v969_v3  ;;  %v981_v11 = vpack.c.bf16 (!%p242_p9), %v440_v10, %v439_v9  ;;  %v442_v13 = vld [vmem:[%s1413_s3 + $0x38] sm:$0xff] (!%p242_p9)  ;;  %v443_v20 = vld [vmem:[%s1413_s3 + $0x40] sm:$0xff] (!%p242_p9)  ;;  %v444_v21 = vld [vmem:[%s1413_s3 + $0x48] sm:$0xff] (!%p242_p9)  ;;  %s1363_s15 = scalar_lea.hbm (!%p242_p9), %s1417_s7, %s806_s8  ;;  %s1369_s28 = scalar_lea.sflag (!%p242_p9), [#allocation3], %s270_s22 }
  0x11   : > { %972 = vmatpush3.bf16.msra.mxu0 (!%p242_p9), %v969_v3  ;;  %974 = vmatprep.subr.bf16.mxu1 (!%p242_p9), %v973_v7  ;;  %v985_v18 = vpack.c.bf16 (!%p242_p9), %v442_v13, %v441_v12  ;;  %v989_v23 = vpack.c.bf16 (!%p242_p9), %v444_v21, %v443_v20  ;;  %v445_v25 = vld [vmem:[%s1413_s3 + $0x50] sm:$0xff] (!%p242_p9)  ;;  %v446_v26 = vld [vmem:[%s1413_s3 + $0x58] sm:$0xff] (!%p242_p9)  ;;  %v447_v29 = vld [vmem:[%s1413_s3 + $0x60] sm:$0xff] (!%p242_p9)  ;;  %s1142_s18 = smov (!%p242_p9), [#allocation2]  }
  0x12   : > { %976 = vmatpush3.bf16.msra.mxu1 (!%p242_p9), %v973_v7  ;;  %v993_v28 = vpack.c.bf16 (!%p242_p9), %v446_v26, %v445_v25  ;;  %v448_v30 = vld [vmem:[%s1413_s3 + $0x68] sm:$0xff] (!%p242_p9)  ;;  %v449_v32 = vld [vmem:[%s1413_s3 + $0x70] sm:$0xff] (!%p242_p9)  ;;  %v450_v33 = vld [vmem:[%s1413_s3 + $0x78] sm:$0xff] (!%p242_p9)  ;;  %s1082_s19 = sshll.u32 (!%p242_p9), %s1142_s18, 4  ;;  %s1083_s19 = int_to_ptr.vmem [resolvable:$false] %s1082_s19 }
  0x13   : > { %978 = vmatprep.subr.bf16.mxu1 (!%p242_p9), %v977_v8  ;;  %v997_v31 = vpack.c.bf16 (!%p242_p9), %v448_v30, %v447_v29  ;;  %v1001_v34 = vpack.c.bf16 (!%p242_p9), %v450_v33, %v449_v32  ;;  %v571_v35 = vld [vmem:[%s1415_s5] sm:$0xff] (!%p242_p9)  ;;  %v572_v36 = vld [vmem:[%s1415_s5 + $0x8] sm:$0xff] (!%p242_p9)  ;;  %v573_v37 = vld [vmem:[%s1415_s5 + $0x10] sm:$0xff] (!%p242_p9)  ;;  %s1084_s21 = scalar_lea.vmem (!%p242_p9), %s1083_s19, 2048 }
  0x14   : > { %v1005_v38 = vpack.c.bf16 (!%p242_p9), %v572_v36, %v571_v35  ;;  %v574_v39 = vld [vmem:[%s1415_s5 + $0x18] sm:$0xff] (!%p242_p9)  ;;  %v575_v41 = vld [vmem:[%s1415_s5 + $0x20] sm:$0xff] (!%p242_p9)  ;;  %v576_v42 = vld [vmem:[%s1415_s5 + $0x28] sm:$0xff] (!%p242_p9) }
  0x15   : > { %s1425_s17 = smov (!%p274_p10, %s788_s17), 31  ;;  %v1009_v40 = vpack.c.bf16 %v574_v39, %v573_v37  ;;  %v1013_v43 = vpack.c.bf16 %v576_v42, %v575_v41  ;;  %v577_v44 = vld [vmem:[%s1415_s5 + $0x30] sm:$0xff]  ;;  %v578_v45 = vld [vmem:[%s1415_s5 + $0x38] sm:$0xff]  ;;  %v579_v47 = vld [vmem:[%s1415_s5 + $0x40] sm:$0xff] }
  0x16   : > { %s789_s16 = sshll.u32 %s1425_s17, 3  ;;  %980 = vmatpush3.bf16.msra.mxu1 %v977_v8  ;;  %1006 = vmatprep.subr.bf16.mxu0 %v1005_v38  ;;  %v1017_v46 = vpack.c.bf16 %v578_v45, %v577_v44  ;;  %v580_v48 = vld [vmem:[%s1415_s5 + $0x48] sm:$0xff]  ;;  %v581_v50 = vld [vmem:[%s1415_s5 + $0x50] sm:$0xff]  ;;  %v582_v51 = vld [vmem:[%s1415_s5 + $0x58] sm:$0xff]  ;;  %s272_s17 = scalar_lea.vmem [#allocation2], %s787_s23 }
  0x17   : > { %s277_s20 = scalar_lea.vmem %s1410_s0, %s789_s16  ;;  %982 = vmatprep.subr.bf16.mxu1 %v981_v11  ;;  %v1021_v49 = vpack.c.bf16 %v580_v48, %v579_v47  ;;  %v1025_v52 = vpack.c.bf16 %v582_v51, %v581_v50  ;;  %v583_v53 = vld [vmem:[%s1415_s5 + $0x60] sm:$0xff]  ;;  %v584_v54 = vld [vmem:[%s1415_s5 + $0x68] sm:$0xff]  ;;  %s721_s9 = sshll.u32 %s272_s17, 4  ;;  %s1365_s9 = int_to_ptr.vmem [resolvable:$true] %s721_s9 }
  0x18   : > { %v280_v14 = vld [vmem:[%s277_s20] sm:$0xff]  ;;  %v281_v15 = vld [vmem:[%s277_s20 + $0x8] sm:$0xff]  ;;  %v282_v16 = vld [vmem:[%s277_s20 + $0x10] sm:$0xff]  ;;  %v1029_v55 = vpack.c.bf16 %v584_v54, %v583_v53  ;;  %s1078_s16 = scalar_lea.vmem %s1365_s9, 1024  ;;  %p1085_p0 = scmp.lt.s32.totalorder %s1365_s9, %s1083_s19 }
  0x19   : > { %869 = vmatprep.mubr.msk.f32.mxu0 %vm297_vm0, %v280_v14  ;;  %v283_v17 = vld [vmem:[%s277_s20 + $0x18] sm:$0xff]  ;;  %v284_v19 = vld [vmem:[%s277_s20 + $0x20] sm:$0xff]  ;;  %v285_v22 = vld [vmem:[%s277_s20 + $0x28] sm:$0xff]  ;;  %p1079_p11 = scmp.ne.s32.totalorder %s1365_s9, %s1078_s16  ;;  %p1086_p1 = scmp.lt.s32.totalorder %s1084_s21, %s1078_s16 }
  0x1a   : > { %870 = vmatmul.mubr.msk.f32.vlgmr.msra.gmra.mrb[0].mxu0 %vm297_vm0, %v281_v15  ;;  %984 = vmatpush3.bf16.msra.mxu1 %v981_v11  ;;  %v286_v24 = vld [vmem:[%s277_s20 + $0x30] sm:$0xff]  ;;  %v287_v27 = vld [vmem:[%s277_s20 + $0x38] sm:$0xff]  ;;  %v790_v56 = vld [vmem:[%s1412_s2] ss:$0 sm:$0xff] }
  0x1b   : > { %872 = vmatprep.mubr.msk.f32.mxu0 %vm297_vm0, %v282_v16  ;;  %986 = vmatprep.subr.bf16.mxu1 %v985_v18  ;;  %v799_v20 = vld [vmem:[%s1414_s4] ss:$0 sm:$0xff]  ;;  %p1080_p12 = pnand %p1079_p11, %p1223_p5  ;;  %p1087_p2 = por %p1086_p1, %p1085_p0 }
  0x1c   : > { %1008 = vmatpush3.bf16.msra.mxu0 %v1005_v38  ;;  %v800_v45 = vld [vmem:[%s1416_s6] ss:$0 sm:$0xff] }
  0x1d   : > { %1010 = vmatprep.subr.bf16.mxu0 %v1009_v40  ;;  %p1081_p13 = pneg %p1080_p12 }
  0x1e   : > { %873 = vmatmul.mubr.msk.f32.gmra.mrb[2].mxu0 %vm297_vm0, %v283_v17  ;;  %988 = vmatpush3.bf16.msra.mxu1 %v985_v18  ;;  %v585_v17 = vld [vmem:[%s1415_s5 + $0x70] sm:$0xff]  ;;  %v586_v18 = vld [vmem:[%s1415_s5 + $0x78] sm:$0xff] }
  0x1f   : > { %875 = vmatprep.mubr.msk.f32.mxu0 %vm297_vm0, %v284_v19  ;;  %990 = vmatprep.subr.bf16.mxu1 %v989_v23  ;;  %v1033_v19 = vpack.c.bf16 %v586_v18, %v585_v17  ;;  %p1088_p3 = pnand %p1087_p2, %p1081_p13 }
  0x20   : > { %1012 = vmatpush3.bf16.msra.mxu0 %v1009_v40 }
  0x21   : > { %1014 = vmatprep.subr.bf16.mxu0 %v1013_v43 }
  0x22   : > { %876 = vmatmul.mubr.msk.f32.gmra.mrb[4].mxu0 %vm297_vm0, %v285_v22  ;;  %992 = vmatpush3.bf16.msra.mxu1 %v989_v23 }
  0x23   : > { %878 = vmatprep.mubr.msk.f32.mxu0 %vm297_vm0, %v286_v24  ;;  %994 = vmatprep.subr.bf16.mxu1 %v993_v28 }
  0x24   : > { %1016 = vmatpush3.bf16.msra.mxu0 %v1013_v43 }
  0x25   : > { %1018 = vmatprep.subr.bf16.mxu0 %v1017_v46 }
  0x26   : > { %879 = vmatmul.mubr.msk.f32.gmra.mrb[6].mxu0 %vm297_vm0, %v287_v27  ;;  %996 = vmatpush3.bf16.msra.mxu1 %v993_v28 }
  0x27   : > { %998 = vmatprep.subr.bf16.mxu1 %v997_v31 }
  0x28   : > { %1020 = vmatpush3.bf16.msra.mxu0 %v1017_v46 }
  0x29   : > { %1022 = vmatprep.subr.bf16.mxu0 %v1021_v49 }
  0x2a   : > { %1000 = vmatpush3.bf16.msra.mxu1 %v997_v31 }
  0x2b   : > { %1002 = vmatprep.subr.bf16.mxu1 %v1001_v34 }
  0x2c   : > { %1024 = vmatpush3.bf16.msra.mxu0 %v1021_v49 }
  0x2d   : > { %1026 = vmatprep.subr.bf16.mxu0 %v1025_v52 }
  0x2e   : > { %1004 = vmatpush3.bf16.msra.mxu1 %v1001_v34 }
  0x30   : > { %1028 = vmatpush3.bf16.msra.mxu0 %v1025_v52 }
  0x31   : > { %1030 = vmatprep.subr.bf16.mxu0 %v1029_v55 }
  0x34   : > { %1032 = vmatpush3.bf16.msra.mxu0 %v1029_v55 }
  0x35   : > { %1034 = vmatprep.subr.bf16.mxu0 %v1033_v19 }
  0x38   : > { %1036 = vmatpush3.bf16.msra.mxu0 %v1033_v19 }
  0xed   : > { %v871_v57 = vpop.f32.mrb[0].mxu0 }
  0xee   : > { %v394_v58 = vadd.f32 %v871_v57, %v790_v56  ;;  %v388_v59 = vpop.f32.mrb[1].mxu0 }
  0xef   : > { %v389_v60 = vadd.f32 %v790_v56, %v388_v59 }
  0xf0   : > { %v428_v63 = vmax.f32 %v394_v58, 0.0 }
  0xf1   : > { %v874_v61 = vpop.f32.mrb[2].mxu0  ;;  %v427_v62 = vmax.f32 %v389_v60, 0.0 }
  0xf2   : > { %v404_v0 = vadd.f32 %v874_v61, %v790_v56  ;;  %v398_v1 = vpop.f32.mrb[3].mxu0 }
  0xf3   : > { %v399_v2 = vadd.f32 %v790_v56, %v398_v1  ;;  %913 = vmatprep.mubr.f32.mxu1 %v427_v62 }
  0xf4   : > { %914 = vmatmul.mubr.f32.vlgmr.msra.gmra.mrb[0].mxu1 %v428_v63  ;;  %v430_v5 = vmax.f32 %v404_v0, 0.0 }
  0xf5   : > { %v429_v3 = vmax.f32 %v399_v2, 0.0  ;;  %v877_v4 = vpop.f32.mrb[4].mxu0 }
  0xf6   : > { %v414_v6 = vadd.f32 %v877_v4, %v790_v56  ;;  %v408_v7 = vpop.f32.mrb[5].mxu0 }
  0xf7   : > { %v409_v8 = vadd.f32 %v790_v56, %v408_v7  ;;  %916 = vmatprep.mubr.f32.mxu1 %v429_v3 }
  0xf8   : > { %917 = vmatmul.mubr.f32.gmra.mrb[2].mxu1 %v430_v5  ;;  %v432_v11 = vmax.f32 %v414_v6, 0.0 }
  0xf9   : > { %v431_v9 = vmax.f32 %v409_v8, 0.0  ;;  %v880_v10 = vpop.f32.mrb[6].mxu0 }
  0xfa   : > { %v424_v12 = vadd.f32 %v880_v10, %v790_v56  ;;  %v418_v13 = vpop.f32.mrb[7].mxu0 }
  0xfb   : > { %v419_v14 = vadd.f32 %v790_v56, %v418_v13  ;;  %919 = vmatprep.mubr.f32.mxu1 %v431_v9 }
  0xfc   : > { %920 = vmatmul.mubr.f32.gmra.mrb[4].mxu1 %v432_v11  ;;  %v434_v16 = vmax.f32 %v424_v12, 0.0 }
  0xfd   : > { %v433_v15 = vmax.f32 %v419_v14, 0.0 }
  0xff   : > { %922 = vmatprep.mubr.f32.mxu1 %v433_v15 }
 0x100   : > { %923 = vmatmul.mubr.f32.gmra.mrb[6].mxu1 %v434_v16 }
 0x1c7   : > { %v915_v21 = vpop.f32.mrb[0].mxu1 }
 0x1c8   : > { %v530_v22 = vadd.f32 %v915_v21, %v799_v20  ;;  %v524_v23 = vpop.f32.mrb[1].mxu1 }
 0x1c9   : > { %v525_v24 = vadd.f32 %v799_v20, %v524_v23 }
 0x1ca   : > { %v564_v27 = vmax.f32 %v530_v22, 0.0 }
 0x1cb   : > { %v563_v25 = vmax.f32 %v525_v24, 0.0  ;;  %v918_v26 = vpop.f32.mrb[2].mxu1 }
 0x1cc   : > { %v540_v28 = vadd.f32 %v918_v26, %v799_v20  ;;  %v534_v29 = vpop.f32.mrb[3].mxu1 }
 0x1cd   : > { %v535_v30 = vadd.f32 %v799_v20, %v534_v29  ;;  %957 = vmatprep.mubr.f32.mxu0 %v563_v25 }
 0x1ce   : > { %958 = vmatmul.mubr.f32.vlgmr.msra.gmra.mrb[8].mxu0 %v564_v27  ;;  %v566_v33 = vmax.f32 %v540_v28, 0.0 }
 0x1cf   : > { %v565_v31 = vmax.f32 %v535_v30, 0.0  ;;  %v921_v32 = vpop.f32.mrb[4].mxu1 }
 0x1d0   : > { %v550_v34 = vadd.f32 %v921_v32, %v799_v20  ;;  %v544_v35 = vpop.f32.mrb[5].mxu1 }
 0x1d1   : > { %v545_v36 = vadd.f32 %v799_v20, %v544_v35  ;;  %960 = vmatprep.mubr.f32.mxu0 %v565_v31 }
 0x1d2   : > { %961 = vmatmul.mubr.f32.gmra.mrb[10].mxu0 %v566_v33  ;;  %v568_v39 = vmax.f32 %v550_v34, 0.0 }
 0x1d3   : > { %v567_v37 = vmax.f32 %v545_v36, 0.0  ;;  %v924_v38 = vpop.f32.mrb[6].mxu1 }
 0x1d4   : > { %v560_v40 = vadd.f32 %v924_v38, %v799_v20  ;;  %v554_v41 = vpop.f32.mrb[7].mxu1 }
 0x1d5   : > { %v555_v42 = vadd.f32 %v799_v20, %v554_v41  ;;  %963 = vmatprep.mubr.f32.mxu0 %v567_v37 }
 0x1d6   : > { %964 = vmatmul.mubr.f32.gmra.mrb[12].mxu0 %v568_v39  ;;  %v570_v44 = vmax.f32 %v560_v40, 0.0 }
 0x1d7   : > { %v569_v43 = vmax.f32 %v555_v42, 0.0 }
 0x1d9   : > { %966 = vmatprep.mubr.f32.mxu0 %v569_v43 }
 0x1da   : > { %967 = vmatmul.mubr.f32.gmra.mrb[14].mxu0 %v570_v44 }
 0x2a1   : > { %v959_v46 = vpop.f32.mrb[8].mxu0 }
 0x2a2   : > { %v666_v47 = vadd.f32 %v959_v46, %v800_v45  ;;  %v660_v48 = vpop.f32.mrb[9].mxu0 }
 0x2a3   : > { %v661_v49 = vadd.f32 %v800_v45, %v660_v48 }
 0x2a4   : > { %700 = vst [vmem:[%s272_s17 + $0x8] sm:$0xff] %v666_v47 }
 0x2a5   : > { %699 = vst [vmem:[%s272_s17] sm:$0xff] %v661_v49  ;;  %v962_v50 = vpop.f32.mrb[10].mxu0 }
 0x2a6   : > { %v676_v51 = vadd.f32 %v962_v50, %v800_v45  ;;  %v670_v52 = vpop.f32.mrb[11].mxu0 }
 0x2a7   : > { %v671_v53 = vadd.f32 %v800_v45, %v670_v52 }
 0x2a8   : > { %702 = vst [vmem:[%s272_s17 + $0x18] sm:$0xff] %v676_v51 }
 0x2a9   : > { %701 = vst [vmem:[%s272_s17 + $0x10] sm:$0xff] %v671_v53  ;;  %v965_v54 = vpop.f32.mrb[12].mxu0 }
 0x2aa   : > { %v686_v55 = vadd.f32 %v965_v54, %v800_v45  ;;  %v680_v56 = vpop.f32.mrb[13].mxu0 }
 0x2ab   : > { %v681_v57 = vadd.f32 %v800_v45, %v680_v56 }
 0x2ac   : > { %704 = vst [vmem:[%s272_s17 + $0x28] sm:$0xff] %v686_v55 }
 0x2ad   : > { %703 = vst [vmem:[%s272_s17 + $0x20] sm:$0xff] %v681_v57  ;;  %v968_v58 = vpop.f32.mrb[14].mxu0 }
 0x2ae   : > { %v696_v59 = vadd.f32 %v968_v58, %v800_v45  ;;  %v690_v60 = vpop.f32.mrb[15].mxu0 }
 0x2af   : > { %v691_v61 = vadd.f32 %v800_v45, %v690_v60 }
 0x2b0   : > { %706 = vst [vmem:[%s272_s17 + $0x38] sm:$0xff] %v696_v59 }
 0x2b1   : > { %705 = vst [vmem:[%s272_s17 + $0x30] sm:$0xff] %v691_v61 }
 0x2b2   : > { %1091 = shalt.err (!%p1088_p3)
}
 0x2b3   : > { %s1092_s22 = scalar_lea.hbm %s1363_s15, 1024  ;;  %s1096_s20 = scalar_lea.hbm %s1417_s7, 4096 }
 0x2b4   : > { %p1093_p4 = scmp.ne.s32.totalorder %s1363_s15, %s1092_s22  ;;  %p1097_p9 = scmp.lt.u32.totalorder %s1363_s15, %s1417_s7 }
 0x2b5   : > { %p1098_p10 = scmp.lt.u32.totalorder %s1096_s20, %s1092_s22  ;;  %p1100_p12 = scmp.lt.u32.totalorder %s1092_s22, %s1363_s15 }
 0x2b6   : > { %p1094_p7 = pnand %p1093_p4, %p1223_p5 }
 0x2b7   : > { %p1099_p11 = por %p1098_p10, %p1097_p9 }
 0x2b8   : > { %p1095_p8 = pneg %p1094_p7 }
 0x2b9   : > { %p1101_p13 = por %p1100_p12, %p1099_p11 }
 0x2bb   : > { %p1102_p0 = pnand %p1101_p13, %p1095_p8 }
 0x2bd   : > { %1105 = shalt.err (!%p1102_p0)
}
 0x2be   : > { %s1143_s13 = smov 128   ;;  %s1144_s14 = smov 8  }
 0x2bf   : > { %1037 = dma.vmem_to_hbm [thread:$0]  (%p1223_p5), %s1365_s9, 1024, %s1363_s15, %s1369_s28, %s1143_s13, %s1143_s13, %s1144_s14  }
 0x2c0 PF: > { %p1043_p1 = scmp.ge.s32.totalorder %s1140_s27, 2  ;;  %s736_s16 = sand.u32 1, %s1128_s24  }
 0x2c1   : > { %s737_s18 = scalar_lea.sflag [#allocation3], %s736_s16 }
 0x2c2   : > { %p1040_p2 = pnand %p1043_p1, %p1227_p6 }
 0x2c4   : > { %1123 = dma.done.wait (!%p1040_p2), %s737_s18, 1024  }
 0x2c5   : > { %1125 = vsyncadd (!%p1040_p2), %s737_s18, 4294966272  ;;  %p17_p3 = scmp.ge.s32.totalorder %s1210_s30, 6   ;;  %s1420_s24 = smov %s1132_s25 }
 0x2c6   : > { %s1421_s25 = smov %s1136_s26  ;;  %s1422_s26 = smov %s1221_s10 }
 0x2c7   : > { %s1423_s27 = smov %s1210_s30  ;;  %19 = sbr.rel (!%p17_p3) target bundleno = 3 (0x3), region = 83 }
 0x2ce   :  { %742 = vsyncpa [#allocation3], 1 }
 0x2cf   :  { %744 = vsyncpa [#allocation3 + $0x1], 1 }

</bundles_post_ra>
